<compile_context>
chip_gen: v7x
topology: tpu7x:2x2x1
jax: 0.10.0
libtpu: 0.0.40
codegen_flags: <defaults>
</compile_context>

<pallas_src>
import math
from functools import partial

import jax
import jax.numpy as jnp
from jax.experimental import pallas as pl
from jax.experimental.pallas import tpu as pltpu


def _same_pad_amounts(in_h, in_w, kernel_size, stride):
    """Static Python ints; exactly mirrors the PyTorch module's arithmetic."""
    kh, kw = kernel_size
    sh, sw = stride
    out_h = math.ceil(float(in_h) / float(sh))
    out_w = math.ceil(float(in_w) / float(sw))
    pad_along_h = max((out_h - 1) * sh + kh - in_h, 0)
    pad_along_w = max((out_w - 1) * sw + kw - in_w, 0)
    pad_top = pad_along_h // 2
    pad_left = pad_along_w // 2
    pad_bottom = pad_along_h - pad_top
    pad_right = pad_along_w - pad_left
    return pad_top, pad_bottom, pad_left, pad_right


def _pad_kernel(x_ref, o_ref, *, pad_top, pad_bottom, pad_left, pad_right,
                in_h, in_w):
    # x_ref: (bc, in_h, in_w)   o_ref: (bc, out_h, out_w)
    # Every output element is written exactly once: one interior store plus
    # zero stores for the (statically) non-empty border slices.
    bc, _, out_w = o_ref.shape

    o_ref[:, pl.ds(pad_top, in_h), pl.ds(pad_left, in_w)] = x_ref[...]

    if pad_top > 0:
        o_ref[:, pl.ds(0, pad_top), :] = jnp.zeros(
            (bc, pad_top, out_w), o_ref.dtype)
    if pad_bottom > 0:
        o_ref[:, pl.ds(pad_top + in_h, pad_bottom), :] = jnp.zeros(
            (bc, pad_bottom, out_w), o_ref.dtype)
    if pad_left > 0:
        o_ref[:, pl.ds(pad_top, in_h), pl.ds(0, pad_left)] = jnp.zeros(
            (bc, in_h, pad_left), o_ref.dtype)
    if pad_right > 0:
        o_ref[:, pl.ds(pad_top, in_h), pl.ds(pad_left + in_w, pad_right)] = jnp.zeros(
            (bc, in_h, pad_right), o_ref.dtype)


def conv2d_same_pad(x, kernel_size, stride):
    """TF-'SAME' zero padding of an NCHW tensor (the reference module only pads)."""
    if not isinstance(kernel_size, (list, tuple)):
        kernel_size = (kernel_size, kernel_size)
    if not isinstance(stride, (list, tuple)):
        stride = (stride, stride)

    n, c, in_h, in_w = x.shape
    pad_top, pad_bottom, pad_left, pad_right = _same_pad_amounts(
        in_h, in_w, tuple(kernel_size), tuple(stride))
    out_h = in_h + pad_top + pad_bottom
    out_w = in_w + pad_left + pad_right

    if (pad_top | pad_bottom | pad_left | pad_right) == 0:
        return x  # nothing to pad

    # Fold N*C into one axis (free, layout-preserving reshape) so one grid step
    # moves many channels at once.
    nc = n * c
    x_folded = x.reshape(nc, in_h, in_w)

    # Pick the per-step channel block:
    #  - double-buffered (in + out) tiles stay under ~8 MiB total, safe under
    #    the scoped-VMEM default on v5e/v6e/v7x (no vmem_limit_bytes needed);
    #  - keep >= 2 grid steps when possible so the "parallel" axis can shard
    #    across v7x's 2 TensorCores;
    #  - bc divides nc exactly so no ragged last block.
    itemsize = jnp.dtype(x.dtype).itemsize
    per_slice_bytes = (in_h * in_w + out_h * out_w) * itemsize
    vmem_budget_bytes = 8 * 1024 * 1024
    bc_cap = max(1, vmem_budget_bytes // (2 * per_slice_bytes))
    bc_target = min(bc_cap, max(1, nc // 2)) if nc >= 2 else 1
    bc = 1
    for d in range(1, bc_target + 1):
        if nc % d == 0:
            bc = d
    grid = (nc // bc,)

    kernel = partial(_pad_kernel, pad_top=pad_top, pad_bottom=pad_bottom,
                     pad_left=pad_left, pad_right=pad_right,
                     in_h=in_h, in_w=in_w)

    out_folded = pl.pallas_call(
        kernel,
        out_shape=jax.ShapeDtypeStruct((nc, out_h, out_w), x.dtype),
        grid=grid,
        in_specs=[pl.BlockSpec((bc, in_h, in_w), lambda i: (i, 0, 0))],
        out_specs=pl.BlockSpec((bc, out_h, out_w), lambda i: (i, 0, 0)),
        compiler_params=pltpu.CompilerParams(
            dimension_semantics=("parallel",)),
    )(x_folded)

    return out_folded.reshape(n, c, out_h, out_w)


if __name__ == "__main__":
    key = jax.random.PRNGKey(0)
    # Small shapes consistent with the module: NCHW = (2, 4, 16, 16)
    x = jax.random.normal(key, (2, 4, 16, 16), dtype=jnp.float32)

    kernel_size = 3
    stride = 2

    out = conv2d_same_pad(x, kernel_size, stride)
    out = jax.block_until_ready(out)

    # Reference (plain JAX) check of the same TF-'SAME' padding semantics.
    pt, pb, p_l, p_r = _same_pad_amounts(x.shape[2], x.shape[3],
                                         (kernel_size, kernel_size),
                                         (stride, stride))
    ref = jnp.pad(x, ((0, 0), (0, 0), (pt, pb), (p_l, p_r)),
                  mode="constant", constant_values=0.0)
    assert out.shape == ref.shape, (out.shape, ref.shape)
    assert jnp.array_equal(out, ref), "mismatch vs reference padding"

    print("KERNEL_OK")
</pallas_src>

<mosaic_0001>
module attributes {stable_mosaic.version = 11 : i64} {
  func.func @_pad_kernel(%arg0: i32, %arg1: memref<4x16x16xf32, #tpu.memory_space<vmem>>, %arg2: memref<4x17x17xf32, #tpu.memory_space<vmem>>) attributes {dimension_semantics = [#tpu.dimension_semantics<parallel>], iteration_bounds = array<i64: 2>, scalar_prefetch = 0 : i64, scratch_operands = 0 : i64, tpu.core_type = #tpu.core_type<tc>, window_params = [{transform_indices = @transform_0, window_bounds = array<i64: 4, 16, 16>}, {transform_indices = @transform_1, window_bounds = array<i64: 4, 17, 17>}]} {
    %c0 = arith.constant 0 : index
    %c0_0 = arith.constant 0 : index
    %c0_1 = arith.constant 0 : index
    %0 = vector.load %arg1[%c0, %c0_0, %c0_1] : memref<4x16x16xf32, #tpu.memory_space<vmem>>, vector<4x16x16xf32>
    %c0_2 = arith.constant 0 : index
    %c0_3 = arith.constant 0 : index
    %c0_4 = arith.constant 0 : index
    %1 = vector.load %arg2[%c0_2, %c0_3, %c0_4] : memref<4x17x17xf32, #tpu.memory_space<vmem>>, vector<4x16x16xf32>
    tpu.vector_store %arg2[%c0_2, %c0_3, %c0_4], %0 {strides = array<i32>} : memref<4x17x17xf32, #tpu.memory_space<vmem>>, vector<4x16x16xf32>,
    %cst = arith.constant 0.000000e+00 : f32
    %2 = vector.broadcast %cst : f32 to vector<4x1x17xf32>
    %c0_5 = arith.constant 0 : index
    %c16 = arith.constant 16 : index
    %c0_6 = arith.constant 0 : index
    %3 = vector.load %arg2[%c0_5, %c16, %c0_6] : memref<4x17x17xf32, #tpu.memory_space<vmem>>, vector<4x1x17xf32>
    tpu.vector_store %arg2[%c0_5, %c16, %c0_6], %2 {strides = array<i32>} : memref<4x17x17xf32, #tpu.memory_space<vmem>>, vector<4x1x17xf32>,
    %cst_7 = arith.constant 0.000000e+00 : f32
    %4 = vector.broadcast %cst_7 : f32 to vector<4x16x1xf32>
    %c0_8 = arith.constant 0 : index
    %c0_9 = arith.constant 0 : index
    %c16_10 = arith.constant 16 : index
    %5 = vector.load %arg2[%c0_8, %c0_9, %c16_10] : memref<4x17x17xf32, #tpu.memory_space<vmem>>, vector<4x16x1xf32>
    tpu.vector_store %arg2[%c0_8, %c0_9, %c16_10], %4 {strides = array<i32>} : memref<4x17x17xf32, #tpu.memory_space<vmem>>, vector<4x16x1xf32>,
    return
  }
  func.func @transform_0(%arg0: i32) -> (i32, i32, i32) {
    %c0_i32 = arith.constant 0 : i32
    %c0_i32_0 = arith.constant 0 : i32
    %c0_i32_1 = arith.constant 0 : i32
    return %arg0, %c0_i32, %c0_i32_0 : i32, i32, i32
  }
  func.func @transform_1(%arg0: i32) -> (i32, i32, i32) {
    %c0_i32 = arith.constant 0 : i32
    %c0_i32_0 = arith.constant 0 : i32
    %c0_i32_1 = arith.constant 0 : i32
    return %arg0, %c0_i32, %c0_i32_0 : i32, i32, i32
  }
}

</mosaic_0001>

<bundles_post_ra>
// kernel: tpu_custom_call.1
= control target key start
LH: loop header
LB: loop body
LE: loop exit
PB: predicated region body
PF: predicated region fallthrough
CT: control target
= control target key end

     0   :  { %6 = vsyncpa [#allocation3], 0  ;;  %s500_s0 = inlined_call_operand.hbm [shape: f32[8,16,16], index: 0, kind: input, shape index: {}]   ;;  %s501_s1 = inlined_call_operand.vmem [shape: f32[8,17,17], index: 1, kind: output, shape index: {}]  }
   0x1   :  { %8 = vsyncpa [#allocation3 + $0x1], 0  ;;  %s381_s6 = smov 0   ;;  %s383_s7 = smov 0  }
   0x2   :  { %s385_s8 = smov 0   ;;  %s387_s9 = smov 0  }
   0x3 LB: > { %s242_s10 = sadd.s32 4294967295, %s365_s9   ;;  %s401_s11 = sadd.s32 1, %s365_s9   ;;  %s365_s9 = sphi %s387_s9, %s508_s9   ;;  %s361_s8 = sphi %s385_s8, %s507_s8   ;;  %s357_s7 = sphi %s383_s7, %s506_s7   ;;  %s353_s6 = sphi %s381_s6, %s505_s6  }
   0x4   : > { %s18_s12 = ssub.s32 %s365_s9, %s401_s11  ;;  %s21_s13 = sadd.s32 1, %s361_s8 }
   0x5   : > { %p19_p0 = scmp.eq.s32.totalorder %s18_s12, 0  ;;  %p28_p1 = scmp.ne.s32.totalorder %s361_s8, %s357_s7 }
   0x6   : > { %p29_p2 = scmp.eq.s32.totalorder %s365_s9, 0  ;;  %p34_p3 = scmp.ne.s32.totalorder %s357_s7, %s353_s6 }
   0x7   : > { %s411_s14 = scalar_select %p19_p0, %s361_s8, %s21_s13  }
   0x8   : > { %p30_p4 = por %p29_p2, %p28_p1  ;;  %p35_p5 = scmp.eq.s32.totalorder %s242_s10, 0 }
   0x9   : > { %p265_p6 = scmp.lt.s32.totalorder %s365_s9, 2  ;;  %s84_s16 = sand.u32 1, %s361_s8  }
   0xa   : > { %p416_p7 = por %p35_p5, %p34_p3  ;;  %s246_s17 = sshll.u32 %s84_s16, 6 }
   0xb   : > { %s257_s18 = sshll.u32 %s365_s9, 10  ;;  %s88_s22 = scalar_lea.vmem [#allocation2], %s246_s17 }
   0xc   : > { %s425_s21 = scalar_lea.hbm %s500_s0, %s257_s18  ;;  %s96_s23 = sshll.u32 %s88_s22, 4  ;;  %s427_s23 = int_to_ptr.vmem [resolvable:$true] %s96_s23 }
   0xd   : > { %p429_p8 = pnand %p265_p6, %p30_p4  ;;  %s434_s25 = scalar_lea.sflag [#allocation3], %s84_s16 }
   0xe   : > { %s301_s26 = scalar_lea.hbm %s425_s21, 1024  ;;  %s306_s29 = scalar_lea.hbm %s500_s0, 2048 }
   0xf   : > { %p302_p10 = scmp.ne.s32.totalorder %s425_s21, %s301_s26  ;;  %p303_p11 = pneg %p429_p8 }
  0x10   : > { %p307_p0 = scmp.lt.u32.totalorder %s425_s21, %s500_s0  ;;  %p308_p1 = scmp.lt.u32.totalorder %s306_s29, %s301_s26 }
  0x11   : > { %p304_p12 = pnand %p303_p11, %p302_p10  ;;  %p310_p3 = scmp.lt.u32.totalorder %s301_s26, %s425_s21 }
  0x12   : > { %p309_p2 = por %p308_p1, %p307_p0 }
  0x13   : > { %p305_p13 = pneg %p304_p12 }
  0x14   : > { %p311_p4 = por %p310_p3, %p309_p2 }
  0x16   : > { %p312_p5 = pnand %p311_p4, %p305_p13 }
  0x18   : > { %315 = shalt.err (!%p312_p5)
}
  0x19   : > { %s316_s3 = scalar_lea.vmem %s427_s23, 1024  ;;  %s367_s4 = smov [#allocation2]  }
  0x1a   : > { %p317_p6 = scmp.ne.s32.totalorder %s427_s23, %s316_s3  ;;  %s321_s5 = sshll.u32 %s367_s4, 4  ;;  %s322_s5 = int_to_ptr.vmem [resolvable:$false] %s321_s5 }
  0x1b   : > { %s323_s6 = scalar_lea.vmem %s322_s5, 2048  ;;  %p324_p9 = scmp.lt.s32.totalorder %s427_s23, %s322_s5 }
  0x1c   : > { %p319_p10 = pnand %p317_p6, %p303_p11  ;;  %p325_p0 = scmp.lt.s32.totalorder %s323_s6, %s316_s3 }
  0x1e   : > { %p320_p12 = pneg %p319_p10  ;;  %p326_p1 = por %p325_p0, %p324_p9 }
  0x20   : > { %p327_p2 = pnand %p326_p1, %p320_p12 }
  0x22   : > { %330 = shalt.err (!%p327_p2)
}
  0x23   : > { %s368_s12 = smov 128   ;;  %s369_s13 = smov 8  }
  0x24   : > { %264 = dma.hbm_to_vmem [thread:$0]  (!%p429_p8), %s425_s21, 1024, %s427_s23, %s434_s25, %s368_s12, %s368_s12, %s369_s13  }
  0x25   : > { %p104_p11 = scmp.lt.s32.totalorder %s365_s9, 3  ;;  %p504_p13 = scmp.ge.s32.totalorder %s365_s9, 1 }
  0x27   : > { %p105_p3 = pnand %p504_p13, %p104_p11 }
  0x28   : > { %s110_s16 = sand.u32 (!%p105_p3), 1, %s357_s7  }
  0x29   : > { %108 = sbr.rel (%p105_p3) target bundleno = 66 (0x42), region = 24  ;;  %s251_s17 = sshll.u32 (!%p105_p3), %s110_s16, 6 }
  0x2a   : > { %s111_s18 = scalar_lea.sflag (!%p105_p3), [#allocation3], %s110_s16  ;;  %s114_s19 = scalar_lea.vmem (!%p105_p3), [#allocation2], %s251_s17 }
  0x30   : > { %348 = dma.done.wait (%p416_p7), %s111_s18, 1024  }
  0x31   : > { %350 = vsyncadd (%p416_p7), %s111_s18, 4294966272  ;;  %s252_s20 = sshll.u32 %s242_s10, 2  ;;  %vm150_vm0 = vcmask 130048   ;;  %vm159_vm1 = vcmask 131072   ;;  %v142_v0 = vld [vmem:[%s114_s19] sm:$0xff]  ;;  %v143_v1 = vld [vmem:[%s114_s19 + $0x8] sm:$0xff] }
  0x32   : > { %p136_p9 = scmp.lt.s32.totalorder %s252_s20, 7  ;;  %v144_v2 = vld [vmem:[%s114_s19 + $0x10] sm:$0xff]  ;;  %v145_v3 = vld [vmem:[%s114_s19 + $0x18] sm:$0xff]  ;;  %v146_v4 = vld [vmem:[%s114_s19 + $0x20] sm:$0xff]  ;;  %v370_v6 = vmov 0.0   ;;  %vm164_vm2 = vcmask 138368  }
  0x33   : > { %v147_v5 = vld [vmem:[%s114_s19 + $0x28] sm:$0xff]  ;;  %v148_v7 = vld [vmem:[%s114_s19 + $0x30] sm:$0xff]  ;;  %v149_v8 = vld [vmem:[%s114_s19 + $0x38] sm:$0xff] }
  0x34   : > { %s510_s20 = smov (!%p136_p9, %s252_s20), 7 }
  0x35   : > { %s258_s21 = smul.u32 24, %s510_s20 }
  0x37   : > { %s140_s24 = scalar_lea.vmem %s501_s1, %s258_s21 }
  0x38   : > { %151 = vst.msk [vmem:[%s140_s24] sm:$0xff] %vm150_vm0, %v142_v0  ;;  %152 = vst.msk [vmem:[%s140_s24 + $0x8] sm:$0xff] %vm150_vm0, %v143_v1 }
  0x39   : > { %160 = vst.msk [vmem:[%s140_s24 + $0x10] sm:$0x1] %vm159_vm1, %v370_v6  ;;  %161 = vst.msk [vmem:[%s140_s24 + $0x28] sm:$0x1] %vm159_vm1, %v370_v6 }
  0x3a   : > { %153 = vst.msk [vmem:[%s140_s24 + $0x18] sm:$0xff] %vm150_vm0, %v144_v2  ;;  %154 = vst.msk [vmem:[%s140_s24 + $0x20] sm:$0xff] %vm150_vm0, %v145_v3 }
  0x3b   : > { %155 = vst.msk [vmem:[%s140_s24 + $0x30] sm:$0xff] %vm150_vm0, %v146_v4  ;;  %156 = vst.msk [vmem:[%s140_s24 + $0x38] sm:$0xff] %vm150_vm0, %v147_v5 }
  0x3c   : > { %162 = vst.msk [vmem:[%s140_s24 + $0x40] sm:$0x1] %vm159_vm1, %v370_v6  ;;  %163 = vst.msk [vmem:[%s140_s24 + $0x58] sm:$0x1] %vm159_vm1, %v370_v6 }
  0x3d   : > { %157 = vst.msk [vmem:[%s140_s24 + $0x48] sm:$0xff] %vm150_vm0, %v148_v7  ;;  %158 = vst.msk [vmem:[%s140_s24 + $0x50] sm:$0xff] %vm150_vm0, %v149_v8 }
  0x3e   : > { %165 = vst.msk [vmem:[%s140_s24] sm:$0xff] %vm164_vm2, %v370_v6  ;;  %166 = vst.msk [vmem:[%s140_s24 + $0x8] sm:$0xff] %vm164_vm2, %v370_v6 }
  0x3f   : > { %167 = vst.msk [vmem:[%s140_s24 + $0x18] sm:$0xff] %vm164_vm2, %v370_v6  ;;  %168 = vst.msk [vmem:[%s140_s24 + $0x20] sm:$0xff] %vm164_vm2, %v370_v6 }
  0x40   : > { %169 = vst.msk [vmem:[%s140_s24 + $0x30] sm:$0xff] %vm164_vm2, %v370_v6  ;;  %170 = vst.msk [vmem:[%s140_s24 + $0x38] sm:$0xff] %vm164_vm2, %v370_v6 }
  0x41   : > { %171 = vst.msk [vmem:[%s140_s24 + $0x48] sm:$0xff] %vm164_vm2, %v370_v6  ;;  %172 = vst.msk [vmem:[%s140_s24 + $0x50] sm:$0xff] %vm164_vm2, %v370_v6 }
  0x42 PF: > { %p11_p7 = scmp.ge.s32.totalorder %s401_s11, 4   ;;  %s505_s6 = smov %s357_s7 }
  0x43   : > { %s506_s7 = smov %s361_s8  ;;  %s507_s8 = smov %s411_s14 }
  0x44   : > { %s508_s9 = smov %s401_s11  ;;  %13 = sbr.rel (!%p11_p7) target bundleno = 3 (0x3), region = 64 }
  0x4b   :  { %197 = vsyncpa [#allocation3], 1 }
  0x4c   :  { %199 = vsyncpa [#allocation3 + $0x1], 1 }

</bundles_post_ra>
